<compile_context>
chip_gen: v7x
topology: tpu7x:2x2x1
jax: 0.10.0
libtpu: 0.0.40
codegen_flags: <defaults>
</compile_context>

<pallas_src>
import functools
import math

import jax
import jax.numpy as jnp
from jax.experimental import pallas as pl
from jax.experimental.pallas import tpu as pltpu


# ---------------------------------------------------------------------------
# Fused Pallas kernel: one batch element per grid step, all compute in VMEM.
# ---------------------------------------------------------------------------
def _fused_attention_kernel(xq_ref, xk_ref, xv_ref, w_ref, b_ref, o_ref, *,
                            num_heads, d_sub, scale, scrub_nan):
    """Full AttentionEnDe forward for one batch element.

    xq/xk/xv_ref : [attn, d_model]   inputs already in head-merged layout
    w_ref        : [4, d_model, d_model]  kron-expanded, pre-transposed conv
                                          weights (Q, K, V, O): x @ w == conv
    b_ref        : [4, 1, d_model]        expanded biases
    o_ref        : [attn, d_model]        output-conv result, same layout
    """
    # --- Q / K / V 1x1 convolutions as lane-dense [attn,dm] @ [dm,dm] ------
    q = jnp.dot(xq_ref[...], w_ref[0], preferred_element_type=jnp.float32) + b_ref[0]
    k = jnp.dot(xk_ref[...], w_ref[1], preferred_element_type=jnp.float32) + b_ref[1]
    v = jnp.dot(xv_ref[...], w_ref[2], preferred_element_type=jnp.float32) + b_ref[2]

    wo = w_ref[3]
    y = b_ref[3]                      # [1, d_model], broadcasts over attn rows

    # --- multi-head attention; heads are static lane slices (unrolled) -----
    for h in range(num_heads):
        lo = h * d_sub
        q_h = q[:, lo:lo + d_sub]
        k_h = k[:, lo:lo + d_sub]
        v_h = v[:, lo:lo + d_sub]

        # scores = q_h @ k_h.T  (contract last dims; no explicit transpose)
        s = jax.lax.dot_general(q_h, k_h, (((1,), (1,)), ((), ())),
                                preferred_element_type=jnp.float32) * scale
        m = jnp.max(s, axis=-1, keepdims=True)
        e = jnp.exp(s - m)
        denom = jnp.sum(e, axis=-1, keepdims=True)
        # Exact divide kept for tight (1e-4) parity with the f32 reference;
        # `e * pl.reciprocal(denom, approx=True)` would move this to the EUP
        # (negligible on a [attn, attn] tile of this size).
        p = e / denom
        if scrub_nan:
            # Faithful to PyTorch's `temp[scores != scores] = 0.0`, which is
            # applied to the POST-softmax probabilities.
            p = jnp.where(jnp.isnan(p), jnp.zeros_like(p), p)

        av_h = jnp.dot(p, v_h, preferred_element_type=jnp.float32)   # [attn, d_sub]
        # Head merge + output 1x1 conv fused: accumulate against the row block
        # of the output weight that corresponds to this head's columns.
        y = y + jnp.dot(av_h, wo[lo:lo + d_sub, :],
                        preferred_element_type=jnp.float32)

    o_ref[...] = y.astype(o_ref.dtype)


# ---------------------------------------------------------------------------
# Wrapper: layout prep (pure reshapes/one transpose per tensor) + pallas_call
# ---------------------------------------------------------------------------
@functools.partial(jax.jit, static_argnames=("num_heads", "att_direction"))
def attention_ende_forward(key_x, value_x, query_x, params, *, num_heads,
                           att_direction="t"):
    B, C, H, W = query_x.shape
    if att_direction == "t":
        keep, attn = H, W
        perm_in = (0, 3, 1, 2)        # [B, attn=W, C, keep=H]
    elif att_direction == "f":
        keep, attn = W, H
        perm_in = (0, 2, 1, 3)        # [B, attn=H, C, keep=W]
    else:
        raise ValueError("Attention direction error!")

    d_model = C * keep
    if d_model % num_heads != 0:
        raise ValueError("d_model must be divisible by num_heads")
    d_sub = d_model // num_heads

    def to_attn_layout(x):
        # x_flat[b, a, c*keep + k] = x[b, c, k, a] (in the direction's frame)
        return jnp.transpose(x, perm_in).reshape(B, attn, d_model)

    xq = to_attn_layout(query_x)
    xk = to_attn_layout(key_x)
    xv = to_attn_layout(value_x)

    # kron-expanded, pre-transposed 1x1-conv weights so that, in the
    # [attn, d_model] layout, `x @ w_big + b_big` == Conv2d(kernel_size=1).
    eye = jnp.eye(keep, dtype=jnp.float32)
    w_big = jnp.stack([jnp.kron(params[n].T, eye)
                       for n in ("wq", "wk", "wv", "wo")])          # [4, dm, dm]
    b_big = jnp.stack([jnp.repeat(params[n], keep).reshape(1, d_model)
                       for n in ("bq", "bk", "bv", "bo")])          # [4, 1, dm]

    kern = functools.partial(_fused_attention_kernel,
                             num_heads=num_heads, d_sub=d_sub,
                             scale=1.0 / math.sqrt(d_sub), scrub_nan=True)

    x_spec = pl.BlockSpec((None, attn, d_model), lambda b: (b, 0, 0))
    y = pl.pallas_call(
        kern,
        out_shape=jax.ShapeDtypeStruct((B, attn, d_model), jnp.float32),
        grid=(B,),
        in_specs=[
            x_spec, x_spec, x_spec,
            pl.BlockSpec((4, d_model, d_model), lambda b: (0, 0, 0)),  # weights resident
            pl.BlockSpec((4, 1, d_model), lambda b: (0, 0, 0)),        # biases resident
        ],
        out_specs=x_spec,
        compiler_params=pltpu.CompilerParams(
            dimension_semantics=("parallel",)),   # B=2 -> both v7x TensorCores
    )(xq, xk, xv, w_big, b_big)

    # y[b, a, co*keep + k] == out[b, co, k, a] in the direction's spatial frame.
    y = y.reshape(B, attn, C, keep)
    if att_direction == "t":
        return jnp.transpose(y, (0, 2, 3, 1))     # [B, C, H, W]
    else:
        return jnp.transpose(y, (0, 2, 1, 3))     # [B, C, H, W]


# ---------------------------------------------------------------------------
# Pure-JAX reference (mirrors the PyTorch module; correctness check only)
# ---------------------------------------------------------------------------
def reference_forward(key_x, value_x, query_x, params, num_heads,
                      att_direction="t"):
    def ref_conv(x, w, b):
        return jnp.einsum("oc,bchw->bohw", w, x) + b.reshape(1, -1, 1, 1)

    q = ref_conv(query_x, params["wq"], params["bq"])
    k = ref_conv(key_x, params["wk"], params["bk"])
    v = ref_conv(value_x, params["wv"], params["bv"])
    if att_direction == "f":
        q, k, v = (jnp.transpose(t, (0, 1, 3, 2)) for t in (q, k, v))
    B, C, keep, attn = q.shape
    d_sub = (C * keep) // num_heads

    def split(t):
        t = jnp.transpose(t.reshape(B, C * keep, attn), (0, 2, 1))
        return jnp.transpose(t.reshape(B, attn, num_heads, d_sub), (0, 2, 1, 3))

    Q, K, V = split(q), split(k), split(v)
    scores = jnp.einsum("bhqd,bhkd->bhqk", Q, K) / math.sqrt(d_sub)
    p = jax.nn.softmax(scores, axis=-1)
    av = jnp.einsum("bhqk,bhkd->bhqd", p, V)
    av = jnp.transpose(av, (0, 2, 1, 3)).reshape(B, attn, num_heads * d_sub)
    av = jnp.transpose(av, (0, 2, 1)).reshape(B, C, keep, attn)
    if att_direction == "f":
        av = jnp.transpose(av, (0, 1, 3, 2))
    return ref_conv(av, params["wo"], params["bo"])


# ---------------------------------------------------------------------------
# Main
# ---------------------------------------------------------------------------
if __name__ == "__main__":
    # Synthetic config: all four convs are 1x1 with in_channels=out_channels=C.
    B, C, H, W = 2, 8, 16, 16
    num_heads = 4
    assert (C * H) % num_heads == 0 and (C * W) % num_heads == 0

    root = jax.random.PRNGKey(0)
    kq, kk, kv, ko, kbq, kbk, kbv, kbo, kx1, kx2, kx3 = jax.random.split(root, 11)
    scale = 1.0 / math.sqrt(C)
    params = {
        "wq": jax.random.normal(kq, (C, C), jnp.float32) * scale,
        "wk": jax.random.normal(kk, (C, C), jnp.float32) * scale,
        "wv": jax.random.normal(kv, (C, C), jnp.float32) * scale,
        "wo": jax.random.normal(ko, (C, C), jnp.float32) * scale,
        "bq": jax.random.normal(kbq, (C,), jnp.float32) * 0.1,
        "bk": jax.random.normal(kbk, (C,), jnp.float32) * 0.1,
        "bv": jax.random.normal(kbv, (C,), jnp.float32) * 0.1,
        "bo": jax.random.normal(kbo, (C,), jnp.float32) * 0.1,
    }

    key_x = jax.random.normal(kx1, (B, C, H, W), jnp.float32)
    value_x = jax.random.normal(kx2, (B, C, H, W), jnp.float32)
    query_x = jax.random.normal(kx3, (B, C, H, W), jnp.float32)

    ok = True
    for direction in ("t", "f"):
        out = attention_ende_forward(key_x, value_x, query_x, params,
                                     num_heads=num_heads,
                                     att_direction=direction)
        out = jax.block_until_ready(out)
        ref = reference_forward(key_x, value_x, query_x, params,
                                num_heads, att_direction=direction)
        if out.shape != (B, C, H, W):
            ok = False
        if not bool(jnp.allclose(out, ref, rtol=1e-4, atol=1e-4)):
            ok = False

    print("KERNEL_OK" if ok else "KERNEL_MISMATCH")
</pallas_src>

<mosaic_0001>
module attributes {stable_mosaic.version = 11 : i64} {
  func.func @_fused_attention_kernel(%arg0: i32, %arg1: memref<1x16x128xf32, #tpu.memory_space<vmem>>, %arg2: memref<1x16x128xf32, #tpu.memory_space<vmem>>, %arg3: memref<1x16x128xf32, #tpu.memory_space<vmem>>, %arg4: memref<4x128x128xf32, #tpu.memory_space<vmem>>, %arg5: memref<4x1x128xf32, #tpu.memory_space<vmem>>, %arg6: memref<1x16x128xf32, #tpu.memory_space<vmem>>) attributes {dimension_semantics = [#tpu.dimension_semantics<parallel>], iteration_bounds = array<i64: 2>, scalar_prefetch = 0 : i64, scratch_operands = 0 : i64, tpu.core_type = #tpu.core_type<tc>, window_params = [{transform_indices = @transform_0, window_bounds = array<i64: 1, 16, 128>}, {transform_indices = @transform_1, window_bounds = array<i64: 1, 16, 128>}, {transform_indices = @transform_2, window_bounds = array<i64: 1, 16, 128>}, {pipeline_mode = #tpu.pipeline_mode<synchronous>, transform_indices = @transform_3, window_bounds = array<i64: 4, 128, 128>}, {pipeline_mode = #tpu.pipeline_mode<synchronous>, transform_indices = @transform_4, window_bounds = array<i64: 4, 1, 128>}, {transform_indices = @transform_5, window_bounds = array<i64: 1, 16, 128>}]} {
    %c0 = arith.constant 0 : index
    %c0_0 = arith.constant 0 : index
    %c0_1 = arith.constant 0 : index
    %0 = vector.load %arg1[%c0, %c0_0, %c0_1] : memref<1x16x128xf32, #tpu.memory_space<vmem>>, vector<1x16x128xf32>
    %1 = vector.shape_cast %0 : vector<1x16x128xf32> to vector<16x128xf32>
    %c0_2 = arith.constant 0 : index
    %c0_3 = arith.constant 0 : index
    %c0_4 = arith.constant 0 : index
    %2 = vector.load %arg4[%c0_2, %c0_3, %c0_4] : memref<4x128x128xf32, #tpu.memory_space<vmem>>, vector<1x128x128xf32>
    %3 = vector.shape_cast %2 : vector<1x128x128xf32> to vector<128x128xf32>
    %cst = arith.constant dense<0.000000e+00> : vector<16x128xf32>
    %4 = tpu.matmul %1, %3, %cst {dimension_numbers = #tpu.dot_dimension_numbers<[1], [0], [0], [1], [0, 0, 1, 1], [], []>} : vector<16x128xf32>, vector<128x128xf32>, vector<16x128xf32> -> vector<16x128xf32>
    %c0_5 = arith.constant 0 : index
    %c0_6 = arith.constant 0 : index
    %c0_7 = arith.constant 0 : index
    %5 = vector.load %arg5[%c0_5, %c0_6, %c0_7] : memref<4x1x128xf32, #tpu.memory_space<vmem>>, vector<1x1x128xf32>
    %6 = vector.shape_cast %5 : vector<1x1x128xf32> to vector<1x128xf32>
    %7 = vector.broadcast %6 : vector<1x128xf32> to vector<16x128xf32>
    %8 = arith.addf %4, %7 : vector<16x128xf32>
    %c0_8 = arith.constant 0 : index
    %c0_9 = arith.constant 0 : index
    %c0_10 = arith.constant 0 : index
    %9 = vector.load %arg2[%c0_8, %c0_9, %c0_10] : memref<1x16x128xf32, #tpu.memory_space<vmem>>, vector<1x16x128xf32>
    %10 = vector.shape_cast %9 : vector<1x16x128xf32> to vector<16x128xf32>
    %c1 = arith.constant 1 : index
    %c0_11 = arith.constant 0 : index
    %c0_12 = arith.constant 0 : index
    %11 = vector.load %arg4[%c1, %c0_11, %c0_12] : memref<4x128x128xf32, #tpu.memory_space<vmem>>, vector<1x128x128xf32>
    %12 = vector.shape_cast %11 : vector<1x128x128xf32> to vector<128x128xf32>
    %cst_13 = arith.constant dense<0.000000e+00> : vector<16x128xf32>
    %13 = tpu.matmul %10, %12, %cst_13 {dimension_numbers = #tpu.dot_dimension_numbers<[1], [0], [0], [1], [0, 0, 1, 1], [], []>} : vector<16x128xf32>, vector<128x128xf32>, vector<16x128xf32> -> vector<16x128xf32>
    %c1_14 = arith.constant 1 : index
    %c0_15 = arith.constant 0 : index
    %c0_16 = arith.constant 0 : index
    %14 = vector.load %arg5[%c1_14, %c0_15, %c0_16] : memref<4x1x128xf32, #tpu.memory_space<vmem>>, vector<1x1x128xf32>
    %15 = vector.shape_cast %14 : vector<1x1x128xf32> to vector<1x128xf32>
    %16 = vector.broadcast %15 : vector<1x128xf32> to vector<16x128xf32>
    %17 = arith.addf %13, %16 : vector<16x128xf32>
    %c0_17 = arith.constant 0 : index
    %c0_18 = arith.constant 0 : index
    %c0_19 = arith.constant 0 : index
    %18 = vector.load %arg3[%c0_17, %c0_18, %c0_19] : memref<1x16x128xf32, #tpu.memory_space<vmem>>, vector<1x16x128xf32>
    %19 = vector.shape_cast %18 : vector<1x16x128xf32> to vector<16x128xf32>
    %c2 = arith.constant 2 : index
    %c0_20 = arith.constant 0 : index
    %c0_21 = arith.constant 0 : index
    %20 = vector.load %arg4[%c2, %c0_20, %c0_21] : memref<4x128x128xf32, #tpu.memory_space<vmem>>, vector<1x128x128xf32>
    %21 = vector.shape_cast %20 : vector<1x128x128xf32> to vector<128x128xf32>
    %cst_22 = arith.constant dense<0.000000e+00> : vector<16x128xf32>
    %22 = tpu.matmul %19, %21, %cst_22 {dimension_numbers = #tpu.dot_dimension_numbers<[1], [0], [0], [1], [0, 0, 1, 1], [], []>} : vector<16x128xf32>, vector<128x128xf32>, vector<16x128xf32> -> vector<16x128xf32>
    %c2_23 = arith.constant 2 : index
    %c0_24 = arith.constant 0 : index
    %c0_25 = arith.constant 0 : index
    %23 = vector.load %arg5[%c2_23, %c0_24, %c0_25] : memref<4x1x128xf32, #tpu.memory_space<vmem>>, vector<1x1x128xf32>
    %24 = vector.shape_cast %23 : vector<1x1x128xf32> to vector<1x128xf32>
    %25 = vector.broadcast %24 : vector<1x128xf32> to vector<16x128xf32>
    %26 = arith.addf %22, %25 : vector<16x128xf32>
    %c3 = arith.constant 3 : index
    %c0_26 = arith.constant 0 : index
    %c0_27 = arith.constant 0 : index
    %27 = vector.load %arg4[%c3, %c0_26, %c0_27] : memref<4x128x128xf32, #tpu.memory_space<vmem>>, vector<1x128x128xf32>
    %28 = vector.shape_cast %27 : vector<1x128x128xf32> to vector<128x128xf32>
    %c3_28 = arith.constant 3 : index
    %c0_29 = arith.constant 0 : index
    %c0_30 = arith.constant 0 : index
    %29 = vector.load %arg5[%c3_28, %c0_29, %c0_30] : memref<4x1x128xf32, #tpu.memory_space<vmem>>, vector<1x1x128xf32>
    %30 = vector.shape_cast %29 : vector<1x1x128xf32> to vector<1x128xf32>
    %31 = vector.extract_strided_slice %8 {offsets = [0, 0], sizes = [16, 32], strides = [1, 1]} : vector<16x128xf32> to vector<16x32xf32>
    %32 = vector.extract_strided_slice %17 {offsets = [0, 0], sizes = [16, 32], strides = [1, 1]} : vector<16x128xf32> to vector<16x32xf32>
    %33 = vector.extract_strided_slice %26 {offsets = [0, 0], sizes = [16, 32], strides = [1, 1]} : vector<16x128xf32> to vector<16x32xf32>
    %cst_31 = arith.constant dense<0.000000e+00> : vector<16x16xf32>
    %34 = tpu.matmul %31, %32, %cst_31 {dimension_numbers = #tpu.dot_dimension_numbers<[1], [1], [0], [0], [0, 0, 1, 0], [], []>} : vector<16x32xf32>, vector<16x32xf32>, vector<16x16xf32> -> vector<16x16xf32>
    %cst_32 = arith.constant 0.176776692 : f32
    %35 = vector.broadcast %cst_32 : f32 to vector<16x16xf32>
    %36 = arith.mulf %34, %35 : vector<16x16xf32>
    %cst_33 = arith.constant dense<0xFF800000> : vector<16xf32>
    %37 = vector.multi_reduction <maximumf>, %36, %cst_33 [1] : vector<16x16xf32> to vector<16xf32>
    %38 = vector.shape_cast %37 : vector<16xf32> to vector<16x1xf32>
    %39 = vector.broadcast %38 : vector<16x1xf32> to vector<16x16xf32>
    %40 = arith.subf %36, %39 : vector<16x16xf32>
    %41 = math.exp %40 : vector<16x16xf32>
    %cst_34 = arith.constant dense<0.000000e+00> : vector<16xf32>
    %42 = vector.multi_reduction <add>, %41, %cst_34 [1] : vector<16x16xf32> to vector<16xf32>
    %43 = vector.shape_cast %42 : vector<16xf32> to vector<16x1xf32>
    %44 = vector.broadcast %43 : vector<16x1xf32> to vector<16x16xf32>
    %45 = arith.divf %41, %44 : vector<16x16xf32>
    %46 = arith.cmpf one, %45, %45 : vector<16x16xf32>
    %cst_35 = arith.constant 0.000000e+00 : f32
    %47 = vector.broadcast %cst_35 : f32 to vector<16x16xf32>
    %48 = arith.select %46, %47, %45 : vector<16x16xi1>, vector<16x16xf32>
    %cst_36 = arith.constant dense<0.000000e+00> : vector<16x32xf32>
    %49 = tpu.matmul %48, %33, %cst_36 {dimension_numbers = #tpu.dot_dimension_numbers<[1], [0], [0], [1], [0, 0, 1, 1], [], []>} : vector<16x16xf32>, vector<16x32xf32>, vector<16x32xf32> -> vector<16x32xf32>
    %50 = vector.extract_strided_slice %28 {offsets = [0, 0], sizes = [32, 128], strides = [1, 1]} : vector<128x128xf32> to vector<32x128xf32>
    %cst_37 = arith.constant dense<0.000000e+00> : vector<16x128xf32>
    %51 = tpu.matmul %49, %50, %cst_37 {dimension_numbers = #tpu.dot_dimension_numbers<[1], [0], [0], [1], [0, 0, 1, 1], [], []>} : vector<16x32xf32>, vector<32x128xf32>, vector<16x128xf32> -> vector<16x128xf32>
    %52 = vector.broadcast %30 : vector<1x128xf32> to vector<16x128xf32>
    %53 = arith.addf %52, %51 : vector<16x128xf32>
    %54 = vector.extract_strided_slice %8 {offsets = [0, 32], sizes = [16, 32], strides = [1, 1]} : vector<16x128xf32> to vector<16x32xf32>
    %55 = vector.extract_strided_slice %17 {offsets = [0, 32], sizes = [16, 32], strides = [1, 1]} : vector<16x128xf32> to vector<16x32xf32>
    %56 = vector.extract_strided_slice %26 {offsets = [0, 32], sizes = [16, 32], strides = [1, 1]} : vector<16x128xf32> to vector<16x32xf32>
    %cst_38 = arith.constant dense<0.000000e+00> : vector<16x16xf32>
    %57 = tpu.matmul %54, %55, %cst_38 {dimension_numbers = #tpu.dot_dimension_numbers<[1], [1], [0], [0], [0, 0, 1, 0], [], []>} : vector<16x32xf32>, vector<16x32xf32>, vector<16x16xf32> -> vector<16x16xf32>
    %cst_39 = arith.constant 0.176776692 : f32
    %58 = vector.broadcast %cst_39 : f32 to vector<16x16xf32>
    %59 = arith.mulf %57, %58 : vector<16x16xf32>
    %cst_40 = arith.constant dense<0xFF800000> : vector<16xf32>
    %60 = vector.multi_reduction <maximumf>, %59, %cst_40 [1] : vector<16x16xf32> to vector<16xf32>
    %61 = vector.shape_cast %60 : vector<16xf32> to vector<16x1xf32>
    %62 = vector.broadcast %61 : vector<16x1xf32> to vector<16x16xf32>
    %63 = arith.subf %59, %62 : vector<16x16xf32>
    %64 = math.exp %63 : vector<16x16xf32>
    %cst_41 = arith.constant dense<0.000000e+00> : vector<16xf32>
    %65 = vector.multi_reduction <add>, %64, %cst_41 [1] : vector<16x16xf32> to vector<16xf32>
    %66 = vector.shape_cast %65 : vector<16xf32> to vector<16x1xf32>
    %67 = vector.broadcast %66 : vector<16x1xf32> to vector<16x16xf32>
    %68 = arith.divf %64, %67 : vector<16x16xf32>
    %69 = arith.cmpf one, %68, %68 : vector<16x16xf32>
    %cst_42 = arith.constant 0.000000e+00 : f32
    %70 = vector.broadcast %cst_42 : f32 to vector<16x16xf32>
    %71 = arith.select %69, %70, %68 : vector<16x16xi1>, vector<16x16xf32>
    %cst_43 = arith.constant dense<0.000000e+00> : vector<16x32xf32>
    %72 = tpu.matmul %71, %56, %cst_43 {dimension_numbers = #tpu.dot_dimension_numbers<[1], [0], [0], [1], [0, 0, 1, 1], [], []>} : vector<16x16xf32>, vector<16x32xf32>, vector<16x32xf32> -> vector<16x32xf32>
    %73 = vector.extract_strided_slice %28 {offsets = [32, 0], sizes = [32, 128], strides = [1, 1]} : vector<128x128xf32> to vector<32x128xf32>
    %cst_44 = arith.constant dense<0.000000e+00> : vector<16x128xf32>
    %74 = tpu.matmul %72, %73, %cst_44 {dimension_numbers = #tpu.dot_dimension_numbers<[1], [0], [0], [1], [0, 0, 1, 1], [], []>} : vector<16x32xf32>, vector<32x128xf32>, vector<16x128xf32> -> vector<16x128xf32>
    %75 = arith.addf %53, %74 : vector<16x128xf32>
    %76 = vector.extract_strided_slice %8 {offsets = [0, 64], sizes = [16, 32], strides = [1, 1]} : vector<16x128xf32> to vector<16x32xf32>
    %77 = vector.extract_strided_slice %17 {offsets = [0, 64], sizes = [16, 32], strides = [1, 1]} : vector<16x128xf32> to vector<16x32xf32>
    %78 = vector.extract_strided_slice %26 {offsets = [0, 64], sizes = [16, 32], strides = [1, 1]} : vector<16x128xf32> to vector<16x32xf32>
    %cst_45 = arith.constant dense<0.000000e+00> : vector<16x16xf32>
    %79 = tpu.matmul %76, %77, %cst_45 {dimension_numbers = #tpu.dot_dimension_numbers<[1], [1], [0], [0], [0, 0, 1, 0], [], []>} : vector<16x32xf32>, vector<16x32xf32>, vector<16x16xf32> -> vector<16x16xf32>
    %cst_46 = arith.constant 0.176776692 : f32
    %80 = vector.broadcast %cst_46 : f32 to vector<16x16xf32>
    %81 = arith.mulf %79, %80 : vector<16x16xf32>
    %cst_47 = arith.constant dense<0xFF800000> : vector<16xf32>
    %82 = vector.multi_reduction <maximumf>, %81, %cst_47 [1] : vector<16x16xf32> to vector<16xf32>
    %83 = vector.shape_cast %82 : vector<16xf32> to vector<16x1xf32>
    %84 = vector.broadcast %83 : vector<16x1xf32> to vector<16x16xf32>
    %85 = arith.subf %81, %84 : vector<16x16xf32>
    %86 = math.exp %85 : vector<16x16xf32>
    %cst_48 = arith.constant dense<0.000000e+00> : vector<16xf32>
    %87 = vector.multi_reduction <add>, %86, %cst_48 [1] : vector<16x16xf32> to vector<16xf32>
    %88 = vector.shape_cast %87 : vector<16xf32> to vector<16x1xf32>
    %89 = vector.broadcast %88 : vector<16x1xf32> to vector<16x16xf32>
    %90 = arith.divf %86, %89 : vector<16x16xf32>
    %91 = arith.cmpf one, %90, %90 : vector<16x16xf32>
    %cst_49 = arith.constant 0.000000e+00 : f32
    %92 = vector.broadcast %cst_49 : f32 to vector<16x16xf32>
    %93 = arith.select %91, %92, %90 : vector<16x16xi1>, vector<16x16xf32>
    %cst_50 = arith.constant dense<0.000000e+00> : vector<16x32xf32>
    %94 = tpu.matmul %93, %78, %cst_50 {dimension_numbers = #tpu.dot_dimension_numbers<[1], [0], [0], [1], [0, 0, 1, 1], [], []>} : vector<16x16xf32>, vector<16x32xf32>, vector<16x32xf32> -> vector<16x32xf32>
    %95 = vector.extract_strided_slice %28 {offsets = [64, 0], sizes = [32, 128], strides = [1, 1]} : vector<128x128xf32> to vector<32x128xf32>
    %cst_51 = arith.constant dense<0.000000e+00> : vector<16x128xf32>
    %96 = tpu.matmul %94, %95, %cst_51 {dimension_numbers = #tpu.dot_dimension_numbers<[1], [0], [0], [1], [0, 0, 1, 1], [], []>} : vector<16x32xf32>, vector<32x128xf32>, vector<16x128xf32> -> vector<16x128xf32>
    %97 = arith.addf %75, %96 : vector<16x128xf32>
    %98 = vector.extract_strided_slice %8 {offsets = [0, 96], sizes = [16, 32], strides = [1, 1]} : vector<16x128xf32> to vector<16x32xf32>
    %99 = vector.extract_strided_slice %17 {offsets = [0, 96], sizes = [16, 32], strides = [1, 1]} : vector<16x128xf32> to vector<16x32xf32>
    %100 = vector.extract_strided_slice %26 {offsets = [0, 96], sizes = [16, 32], strides = [1, 1]} : vector<16x128xf32> to vector<16x32xf32>
    %cst_52 = arith.constant dense<0.000000e+00> : vector<16x16xf32>
    %101 = tpu.matmul %98, %99, %cst_52 {dimension_numbers = #tpu.dot_dimension_numbers<[1], [1], [0], [0], [0, 0, 1, 0], [], []>} : vector<16x32xf32>, vector<16x32xf32>, vector<16x16xf32> -> vector<16x16xf32>
    %cst_53 = arith.constant 0.176776692 : f32
    %102 = vector.broadcast %cst_53 : f32 to vector<16x16xf32>
    %103 = arith.mulf %101, %102 : vector<16x16xf32>
    %cst_54 = arith.constant dense<0xFF800000> : vector<16xf32>
    %104 = vector.multi_reduction <maximumf>, %103, %cst_54 [1] : vector<16x16xf32> to vector<16xf32>
    %105 = vector.shape_cast %104 : vector<16xf32> to vector<16x1xf32>
    %106 = vector.broadcast %105 : vector<16x1xf32> to vector<16x16xf32>
    %107 = arith.subf %103, %106 : vector<16x16xf32>
    %108 = math.exp %107 : vector<16x16xf32>
    %cst_55 = arith.constant dense<0.000000e+00> : vector<16xf32>
    %109 = vector.multi_reduction <add>, %108, %cst_55 [1] : vector<16x16xf32> to vector<16xf32>
    %110 = vector.shape_cast %109 : vector<16xf32> to vector<16x1xf32>
    %111 = vector.broadcast %110 : vector<16x1xf32> to vector<16x16xf32>
    %112 = arith.divf %108, %111 : vector<16x16xf32>
    %113 = arith.cmpf one, %112, %112 : vector<16x16xf32>
    %cst_56 = arith.constant 0.000000e+00 : f32
    %114 = vector.broadcast %cst_56 : f32 to vector<16x16xf32>
    %115 = arith.select %113, %114, %112 : vector<16x16xi1>, vector<16x16xf32>
    %cst_57 = arith.constant dense<0.000000e+00> : vector<16x32xf32>
    %116 = tpu.matmul %115, %100, %cst_57 {dimension_numbers = #tpu.dot_dimension_numbers<[1], [0], [0], [1], [0, 0, 1, 1], [], []>} : vector<16x16xf32>, vector<16x32xf32>, vector<16x32xf32> -> vector<16x32xf32>
    %117 = vector.extract_strided_slice %28 {offsets = [96, 0], sizes = [32, 128], strides = [1, 1]} : vector<128x128xf32> to vector<32x128xf32>
    %cst_58 = arith.constant dense<0.000000e+00> : vector<16x128xf32>
    %118 = tpu.matmul %116, %117, %cst_58 {dimension_numbers = #tpu.dot_dimension_numbers<[1], [0], [0], [1], [0, 0, 1, 1], [], []>} : vector<16x32xf32>, vector<32x128xf32>, vector<16x128xf32> -> vector<16x128xf32>
    %119 = arith.addf %97, %118 : vector<16x128xf32>
    %c0_59 = arith.constant 0 : index
    %c0_60 = arith.constant 0 : index
    %c0_61 = arith.constant 0 : index
    %120 = vector.load %arg6[%c0_59, %c0_60, %c0_61] : memref<1x16x128xf32, #tpu.memory_space<vmem>>, vector<1x16x128xf32>
    %121 = vector.shape_cast %120 : vector<1x16x128xf32> to vector<16x128xf32>
    %122 = vector.shape_cast %119 : vector<16x128xf32> to vector<1x16x128xf32>
    tpu.vector_store %arg6[%c0_59, %c0_60, %c0_61], %122 {strides = array<i32>} : memref<1x16x128xf32, #tpu.memory_space<vmem>>, vector<1x16x128xf32>,
    return
  }
  func.func @transform_0(%arg0: i32) -> (i32, i32, i32) {
    %c0_i32 = arith.constant 0 : i32
    %c0_i32_0 = arith.constant 0 : i32
    %c0_i32_1 = arith.constant 0 : i32
    return %arg0, %c0_i32, %c0_i32_0 : i32, i32, i32
  }
  func.func @transform_1(%arg0: i32) -> (i32, i32, i32) {
    %c0_i32 = arith.constant 0 : i32
    %c0_i32_0 = arith.constant 0 : i32
    %c0_i32_1 = arith.constant 0 : i32
    return %arg0, %c0_i32, %c0_i32_0 : i32, i32, i32
  }
  func.func @transform_2(%arg0: i32) -> (i32, i32, i32) {
    %c0_i32 = arith.constant 0 : i32
    %c0_i32_0 = arith.constant 0 : i32
    %c0_i32_1 = arith.constant 0 : i32
    return %arg0, %c0_i32, %c0_i32_0 : i32, i32, i32
  }
  func.func @transform_3(%arg0: i32) -> (i32, i32, i32) {
    %c0_i32 = arith.constant 0 : i32
    %c0_i32_0 = arith.constant 0 : i32
    %c0_i32_1 = arith.constant 0 : i32
    %c0_i32_2 = arith.constant 0 : i32
    return %c0_i32, %c0_i32_0, %c0_i32_1 : i32, i32, i32
  }
  func.func @transform_4(%arg0: i32) -> (i32, i32, i32) {
    %c0_i32 = arith.constant 0 : i32
    %c0_i32_0 = arith.constant 0 : i32
    %c0_i32_1 = arith.constant 0 : i32
    %c0_i32_2 = arith.constant 0 : i32
    return %c0_i32, %c0_i32_0, %c0_i32_1 : i32, i32, i32
  }
  func.func @transform_5(%arg0: i32) -> (i32, i32, i32) {
    %c0_i32 = arith.constant 0 : i32
    %c0_i32_0 = arith.constant 0 : i32
    %c0_i32_1 = arith.constant 0 : i32
    return %arg0, %c0_i32, %c0_i32_0 : i32, i32, i32
  }
}

</mosaic_0001>

<bundles_post_ra>
// kernel: attention_ende_forward.1
= control target key start
LH: loop header
LB: loop body
LE: loop exit
PB: predicated region body
PF: predicated region fallthrough
CT: control target
= control target key end

     0   :  { %s2536_s18 = smov 0   ;;  %s2885_s0 = inlined_call_operand.vmem [shape: f32[2,16,128], index: 0, kind: input, shape index: {}]   ;;  %s2886_s1 = inlined_call_operand.vmem [shape: f32[2,16,128], index: 1, kind: input, shape index: {}]   ;;  %s2887_s2 = inlined_call_operand.vmem [shape: f32[2,16,128], index: 2, kind: input, shape index: {}]   ;;  %s2888_s3 = inlined_call_operand.vmem [shape: f32[4,128,128], index: 3, kind: input, shape index: {}]   ;;  %s2889_s4 = inlined_call_operand.vmem [shape: f32[4,1,128], index: 4, kind: input, shape index: {}]   ;;  %s2890_s5 = inlined_call_operand.vmem [shape: f32[2,16,128], index: 5, kind: output, shape index: {}]  }
   0x1 LB: > { %s1825_s19 = sadd.s32 4294967295, %s2501_s18   ;;  %p1829_p0 = scmp.ge.s32.totalorder %s2501_s18, 1  ;;  %s2501_s18 = sphi %s2536_s18, %s15_s18  }
   0x2   : > { %p207_p1 = scmp.lt.s32.totalorder %s2501_s18, 3 }
   0x4   : > { %p208_p2 = pnand %p1829_p0, %p207_p1 }
   0x5   : > { %v1839_v0 = vld [vmem:[%s2888_s3 + $0x80] sm:$0xff] (!%p208_p2)  ;;  %v1840_v1 = vld [vmem:[%s2888_s3 + $0x88] sm:$0xff] (!%p208_p2)  ;;  %v1841_v2 = vld [vmem:[%s2888_s3 + $0x90] sm:$0xff] (!%p208_p2)  ;;  %p245_p3 = scmp.lt.s32.totalorder (!%p208_p2), %s1825_s19, 1  ;;  %vm588_vm0 = vcmask (!%p208_p2), 261120   ;;  %vm678_vm2 = vcmask (!%p208_p2), 130048  }
   0x6   : > { %211 = sbr.rel (%p208_p2) target bundleno = 2322 (0x912), region = 40  ;;  %v2278_v3 = vpack.c.bf16 (!%p208_p2), %v1840_v1, %v1839_v0  ;;  %v1842_v4 = vld [vmem:[%s2888_s3 + $0x98] sm:$0xff] (!%p208_p2)  ;;  %v267_v5 = vld [vmem:[%s2888_s3] sm:$0xff] (!%p208_p2)  ;;  %v268_v6 = vld [vmem:[%s2888_s3 + $0x8] sm:$0xff] (!%p208_p2)  ;;  %s2503_s16 = smov (!%p208_p2), 64  }
   0x7   : > { %v2282_v7 = vpack.c.bf16 (!%p208_p2), %v1842_v4, %v1841_v2  ;;  %v2246_v8 = vpack.c.bf16 (!%p208_p2), %v268_v6, %v267_v5  ;;  %v1843_v9 = vld [vmem:[%s2888_s3 + $0xa0] sm:$0xff] (!%p208_p2)  ;;  %v1844_v10 = vld [vmem:[%s2888_s3 + $0xa8] sm:$0xff] (!%p208_p2)  ;;  %v269_v11 = vld [vmem:[%s2888_s3 + $0x10] sm:$0xff] (!%p208_p2)  ;;  %s2504_s17 = smov (!%p208_p2), 96   ;;  %s2505_s29 = smov (!%p208_p2), 32  }
   0x8   : > { %2279 = vmatprep.subr.bf16.mxu1 (!%p208_p2), %v2278_v3  ;;  %v270_v12 = vld [vmem:[%s2888_s3 + $0x18] sm:$0xff] (!%p208_p2)  ;;  %v271_v14 = vld [vmem:[%s2888_s3 + $0x20] sm:$0xff] (!%p208_p2)  ;;  %v272_v15 = vld [vmem:[%s2888_s3 + $0x28] sm:$0xff] (!%p208_p2)  ;;  %v2286_v16 = vpack.c.bf16 (!%p208_p2), %v1844_v10, %v1843_v9 }
   0x9   : > { %2281 = vmatpush3.bf16.msra.mxu1 (!%p208_p2), %v2278_v3  ;;  %2247 = vmatprep.subr.bf16.mxu0 (!%p208_p2), %v2246_v8  ;;  %v2250_v13 = vpack.c.bf16 (!%p208_p2), %v270_v12, %v269_v11  ;;  %v1845_v17 = vld [vmem:[%s2888_s3 + $0xb0] sm:$0xff] (!%p208_p2)  ;;  %v1846_v18 = vld [vmem:[%s2888_s3 + $0xb8] sm:$0xff] (!%p208_p2)  ;;  %v2254_v19 = vpack.c.bf16 (!%p208_p2), %v272_v15, %v271_v14  ;;  %v1847_v24 = vld [vmem:[%s2888_s3 + $0xc0] sm:$0xff] (!%p208_p2) }
   0xa   : > { %2283 = vmatprep.subr.bf16.mxu1 (!%p208_p2), %v2282_v7  ;;  %2249 = vmatpush3.bf16.msra.mxu0 (!%p208_p2), %v2246_v8  ;;  %v273_v20 = vld [vmem:[%s2888_s3 + $0x30] sm:$0xff] (!%p208_p2)  ;;  %v274_v21 = vld [vmem:[%s2888_s3 + $0x38] sm:$0xff] (!%p208_p2)  ;;  %v2290_v22 = vpack.c.bf16 (!%p208_p2), %v1846_v18, %v1845_v17  ;;  %v1848_v25 = vld [vmem:[%s2888_s3 + $0xc8] sm:$0xff] (!%p208_p2) }
   0xb   : > { %2251 = vmatprep.subr.bf16.mxu0 (!%p208_p2), %v2250_v13  ;;  %v2258_v26 = vpack.c.bf16 (!%p208_p2), %v274_v21, %v273_v20  ;;  %v275_v27 = vld [vmem:[%s2888_s3 + $0x40] sm:$0xff] (!%p208_p2)  ;;  %v276_v28 = vld [vmem:[%s2888_s3 + $0x48] sm:$0xff] (!%p208_p2)  ;;  %v2294_v30 = vpack.c.bf16 (!%p208_p2), %v1848_v25, %v1847_v24  ;;  %v1849_v31 = vld [vmem:[%s2888_s3 + $0xd0] sm:$0xff] (!%p208_p2) }
   0xc   : > { %v1850_v32 = vld [vmem:[%s2888_s3 + $0xd8] sm:$0xff] (!%p208_p2)  ;;  %v2262_v33 = vpack.c.bf16 (!%p208_p2), %v276_v28, %v275_v27  ;;  %v277_v34 = vld [vmem:[%s2888_s3 + $0x50] sm:$0xff] (!%p208_p2)  ;;  %v1851_v37 = vld [vmem:[%s2888_s3 + $0xe0] sm:$0xff] (!%p208_p2) }
   0xd   : > { %s2894_s19 = smov (!%p245_p3, %s1825_s19), 1  ;;  %2285 = vmatpush3.bf16.msra.mxu1 %v2282_v7  ;;  %v278_v35 = vld [vmem:[%s2888_s3 + $0x58] sm:$0xff]  ;;  %v2298_v36 = vpack.c.bf16 %v1850_v32, %v1849_v31  ;;  %v1852_v38 = vld [vmem:[%s2888_s3 + $0xe8] sm:$0xff]  ;;  %v279_v40 = vld [vmem:[%s2888_s3 + $0x60] sm:$0xff] }
   0xe   : > { %s2580_s21 = sshll.u32 %s2894_s19, 4  ;;  %2287 = vmatprep.subr.bf16.mxu1 %v2286_v16  ;;  %2253 = vmatpush3.bf16.msra.mxu0 %v2250_v13  ;;  %v2266_v39 = vpack.c.bf16 %v278_v35, %v277_v34  ;;  %v280_v41 = vld [vmem:[%s2888_s3 + $0x68] sm:$0xff]  ;;  %v2302_v42 = vpack.c.bf16 %v1852_v38, %v1851_v37  ;;  %v1853_v43 = vld [vmem:[%s2888_s3 + $0xf0] sm:$0xff]  ;;  %v1854_v44 = vld [vmem:[%s2888_s3 + $0xf8] sm:$0xff] }
   0xf   : > { %s2592_s19 = scalar_lea.vmem %s2886_s1, %s2580_s21  ;;  %s2604_s9 = scalar_lea.vmem %s2885_s0, %s2580_s21  ;;  %2255 = vmatprep.subr.bf16.mxu0 %v2254_v19  ;;  %v2270_v45 = vpack.c.bf16 %v280_v41, %v279_v40  ;;  %v281_v46 = vld [vmem:[%s2888_s3 + $0x70] sm:$0xff]  ;;  %v282_v47 = vld [vmem:[%s2888_s3 + $0x78] sm:$0xff]  ;;  %v2306_v48 = vpack.c.bf16 %v1854_v44, %v1853_v43  ;;  %v1857_v52 = vld [vmem:[%s2888_s3 + $0x100] sm:$0xff] }
  0x10   : > { %v365_v23 = vld [vmem:[%s2592_s19] sm:$0xff]  ;;  %v2274_v49 = vpack.c.bf16 %v282_v47, %v281_v46  ;;  %v366_v50 = vld [vmem:[%s2592_s19 + $0x8] sm:$0xff]  ;;  %v1859_v54 = vld [vmem:[%s2888_s3 + $0x110] sm:$0xff]  ;;  %s2680_s12 = scalar_lea.vmem %s2887_s2, %s2580_s21  ;;  %s264_s8 = scalar_lea.vmem %s2890_s5, %s2580_s21 }
  0x11   : > { %2108 = vmatprep.mubr.f32.mxu1 %v365_v23  ;;  %v265_v29 = vld [vmem:[%s2604_s9] sm:$0xff]  ;;  %2289 = vmatpush3.bf16.msra.mxu1 %v2286_v16  ;;  %v266_v51 = vld [vmem:[%s2604_s9 + $0x8] sm:$0xff]  ;;  %v1860_v56 = vld [vmem:[%s2888_s3 + $0x118] sm:$0xff] }
  0x12   : > { %2073 = vmatprep.mubr.f32.mxu0 %v265_v29  ;;  %2291 = vmatprep.subr.bf16.mxu1 %v2290_v22  ;;  %v1858_v53 = vld [vmem:[%s2888_s3 + $0x108] sm:$0xff]  ;;  %v2314_v57 = vpack.c.bf16 %v1860_v56, %v1859_v54  ;;  %v1861_v58 = vld [vmem:[%s2888_s3 + $0x120] sm:$0xff]  ;;  %v1863_v62 = vld [vmem:[%s2888_s3 + $0x130] sm:$0xff] }
  0x13   : > { %2257 = vmatpush3.bf16.msra.mxu0 %v2254_v19  ;;  %v2310_v55 = vpack.c.bf16 %v1858_v53, %v1857_v52  ;;  %v1862_v59 = vld [vmem:[%s2888_s3 + $0x128] sm:$0xff]  ;;  %v467_v61 = vld [vmem:[%s2680_s12] sm:$0xff]  ;;  %v1864_v63 = vld [vmem:[%s2888_s3 + $0x138] sm:$0xff] }
  0x14   : > { %2259 = vmatprep.subr.bf16.mxu0 %v2258_v26  ;;  %v2318_v60 = vpack.c.bf16 %v1862_v59, %v1861_v58  ;;  %v2322_v0 = vpack.c.bf16 %v1864_v63, %v1863_v62  ;;  %v1865_v1 = vld [vmem:[%s2888_s3 + $0x140] sm:$0xff]  ;;  %v1866_v2 = vld [vmem:[%s2888_s3 + $0x148] sm:$0xff]  ;;  %v1867_v4 = vld [vmem:[%s2888_s3 + $0x150] sm:$0xff] }
  0x15   : > { %2293 = vmatpush3.bf16.msra.mxu1 %v2290_v22  ;;  %v2326_v3 = vpack.c.bf16 %v1866_v2, %v1865_v1  ;;  %v1868_v5 = vld [vmem:[%s2888_s3 + $0x158] sm:$0xff]  ;;  %v1869_v7 = vld [vmem:[%s2888_s3 + $0x160] sm:$0xff]  ;;  %v1870_v8 = vld [vmem:[%s2888_s3 + $0x168] sm:$0xff] }
  0x16   : > { %2295 = vmatprep.subr.bf16.mxu1 %v2294_v30  ;;  %v2330_v6 = vpack.c.bf16 %v1868_v5, %v1867_v4  ;;  %v2334_v9 = vpack.c.bf16 %v1870_v8, %v1869_v7  ;;  %v1871_v10 = vld [vmem:[%s2888_s3 + $0x170] sm:$0xff]  ;;  %v1872_v11 = vld [vmem:[%s2888_s3 + $0x178] sm:$0xff]  ;;  %v468_v13 = vld [vmem:[%s2680_s12 + $0x8] sm:$0xff] }
  0x17   : > { %2261 = vmatpush3.bf16.msra.mxu0 %v2258_v26  ;;  %v2338_v12 = vpack.c.bf16 %v1872_v11, %v1871_v10  ;;  %v1856_v14 = vld [vmem:[%s2889_s4 + $0x1] ss:$0 sm:$0xff]  ;;  %v1838_v16 = vld [vmem:[%s2889_s4] ss:$0 sm:$0xff]  ;;  %vm2722_vm1 = vmpackc.low %vm588_vm0, %vm588_vm0 }
  0x18   : > { %2263 = vmatprep.subr.bf16.mxu0 %v2262_v33  ;;  %v1874_v34 = vld [vmem:[%s2889_s4 + $0x2] ss:$0 sm:$0xff]  ;;  %v1876_v54 = vld [vmem:[%s2888_s3 + $0x188] sm:$0xff]  ;;  %v1877_v56 = vld [vmem:[%s2888_s3 + $0x190] sm:$0xff] }
  0x19   : > { %2297 = vmatpush3.bf16.msra.mxu1 %v2294_v30  ;;  %v1875_v53 = vld [vmem:[%s2888_s3 + $0x180] sm:$0xff] }
  0x1a   : > { %2299 = vmatprep.subr.bf16.mxu1 %v2298_v36 }
  0x1b   : > { %2265 = vmatpush3.bf16.msra.mxu0 %v2262_v33 }
  0x1c   : > { %2267 = vmatprep.subr.bf16.mxu0 %v2266_v39 }
  0x1d   : > { %2301 = vmatpush3.bf16.msra.mxu1 %v2298_v36 }
  0x1e   : > { %2303 = vmatprep.subr.bf16.mxu1 %v2302_v42 }
  0x1f   : > { %2269 = vmatpush3.bf16.msra.mxu0 %v2266_v39 }
  0x20   : > { %2271 = vmatprep.subr.bf16.mxu0 %v2270_v45 }
  0x21   : > { %2305 = vmatpush3.bf16.msra.mxu1 %v2302_v42 }
  0x22   : > { %2307 = vmatprep.subr.bf16.mxu1 %v2306_v48 }
  0x23   : > { %2273 = vmatpush3.bf16.msra.mxu0 %v2270_v45 }
  0x24   : > { %2275 = vmatprep.subr.bf16.mxu0 %v2274_v49 }
  0x25   : > { %2309 = vmatpush3.bf16.msra.mxu1 %v2306_v48 }
  0x27   : > { %2277 = vmatpush3.bf16.msra.mxu0 %v2274_v49 }
  0x28   : > { %2109 = vmatmul.mubr.f32.vlgmr.msra.gmra.mrb[0].mxu1 %v366_v50  ;;  %2311 = vmatprep.subr.bf16.mxu0 %v2310_v55 }
  0x2a   : > { %2074 = vmatmul.mubr.f32.vlgmr.msra.gmra.mrb[0].mxu0 %v266_v51 }
  0x2b   : > { %2313 = vmatpush3.bf16.msra.mxu0 %v2310_v55  ;;  %2143 = vmatprep.mubr.f32.mxu0 %v467_v61  ;;  %v2352_v55 = vpack.c.bf16 %v1876_v54, %v1875_v53 }
  0x2c   : > { %2315 = vmatprep.subr.bf16.mxu0 %v2314_v57 }
  0x2f   : > { %2317 = vmatpush3.bf16.msra.mxu0 %v2314_v57  ;;  %v1878_v57 = vld [vmem:[%s2888_s3 + $0x198] sm:$0xff] }
  0x30   : > { %2319 = vmatprep.subr.bf16.mxu0 %v2318_v60  ;;  %v2356_v58 = vpack.c.bf16 %v1878_v57, %v1877_v56 }
  0x33   : > { %2321 = vmatpush3.bf16.msra.mxu0 %v2318_v60 }
  0x34   : > { %2323 = vmatprep.subr.bf16.mxu0 %v2322_v0 }
  0x37   : > { %2325 = vmatpush3.bf16.msra.mxu0 %v2322_v0 }
  0x38   : > { %2327 = vmatprep.subr.bf16.mxu0 %v2326_v3 }
  0x3b   : > { %2329 = vmatpush3.bf16.msra.mxu0 %v2326_v3 }
  0x3c   : > { %2331 = vmatprep.subr.bf16.mxu0 %v2330_v6 }
  0x3f   : > { %2333 = vmatpush3.bf16.msra.mxu0 %v2330_v6 }
  0x40   : > { %2335 = vmatprep.subr.bf16.mxu0 %v2334_v9 }
  0x43   : > { %2337 = vmatpush3.bf16.msra.mxu0 %v2334_v9 }
  0x44   : > { %2339 = vmatprep.subr.bf16.mxu0 %v2338_v12 }
  0x47   : > { %2341 = vmatpush3.bf16.msra.mxu0 %v2338_v12 }
  0x4a   : > { %2144 = vmatmul.mubr.f32.vlgmr.msra.gmra.mrb[2].mxu0 %v468_v13 }
  0xfb   : > { %v2110_v15 = vpop.f32.mrb[0].mxu1 }
  0xfc   : > { %v464_v17 = vadd.f32 %v2110_v15, %v1856_v14  ;;  %v458_v18 = vpop.f32.mrb[1].mxu1 }
  0xfd   : > { %v2075_v19 = vpop.f32.mrb[0].mxu0  ;;  %v459_v20 = vadd.f32 %v1856_v14, %v458_v18 }
  0xfe   : > { %v356_v21 = vpop.f32.mrb[1].mxu0  ;;  %v2736_v26 = vadd.f32 %v2075_v19, %v1838_v16 }
  0xff   : > { %v2726_v23 = vadd.f32 %v1838_v16, %v356_v21  ;;  %v2342_v24 = vpack.c.bf16 %v464_v17, %v459_v20  ;;  %v2728_v25 = vpack.i.bf16 %v464_v17, %v459_v20 }
 0x101   : > { %2150 = vmatprep.mubr.msk.f32.mxu1 %vm588_vm0, %v2726_v23  ;;  %2344 = vmatprep.subr.msk.bf16.mxu1 %vm2722_vm1, %v2342_v24 }
 0x102   : > { %2347 = vmatpush3.bf16.xpose.msk.msra.mxu1 %vm2722_vm1, %v2342_v24 }
 0x103   : > { %2353 = vmatprep.subr.bf16.mxu1 %v2352_v55 }
 0x109   : > { %2151 = vmatmul.mubr.msk.f32.vlgmr.msra.gmra.mrb[2].mxu1 %vm588_vm0, %v2736_v26 }
 0x10a   : > { %2355 = vmatpush3.bf16.msra.mxu1 %v2352_v55 }
 0x10b   : > { %2357 = vmatprep.subr.bf16.mxu1 %v2356_v58 }
 0x10e   : > { %2359 = vmatpush3.bf16.msra.mxu1 %v2356_v58 }
 0x11d   : > { %v2145_v33 = vpop.f32.mrb[2].mxu0 }
 0x11e   : > { %v560_v35 = vpop.f32.mrb[3].mxu0  ;;  %v2745_v36 = vadd.f32 %v2145_v33, %v1874_v34 }
 0x11f   : > { %v2747_v37 = vadd.f32 %v1874_v34, %v560_v35 }
 0x121   : > { %v2348_v38 = vpack.c.bf16 %v2745_v36, %v2747_v37 }
 0x123   : > { %2349 = vmatprep.subr.bf16.mxu0 %v2348_v38 }
 0x124   : > { %2351 = vmatpush3.bf16.msra.mxu0 %v2348_v38 }
 0x1dc   : > { %v2152_v27 = vpop.f32.mrb[2].mxu1 }
 0x1dd   : > { %v667_v28 = vpop.f32.mrb[3].mxu1  ;;  %v677_v30 = vmul.f32 0.17677669, %v2152_v27 }
 0x1de   : > { %v676_v29 = vmul.f32 0.17677669, %v667_v28 }
 0x1df   : > { %v682_v32 = vsel %vm678_vm2, %v677_v30, -inf }
 0x1e0   : > { %v679_v31 = vsel %vm678_vm2, %v676_v29, -inf }
 0x1e1   : > { %680 = vmax.xlane.f32.xlu0 %v679_v31 }
 0x1e5   : > { %683 = vmax.xlane.f32.xlu0 %v682_v32 }
 0x1fb   : > { %2434 = vrot.lane.b32.xlu0 %v2728_v25, %s2503_s16 }
 0x1ff   : > { %875 = vrot.lane.b32.xlu0 %v2726_v23, %s2504_s17 }
 0x26e   : > { %v681_v39 = vpop.xlane.xlu0 %680 }
 0x26f   : > { %v685_v40 = vsub.f32 %v676_v29, %v681_v39 }
 0x271   : > { %v687_v41 = vmul.f32 1.442695, %v685_v40 }
 0x272   : > { %v684_v42 = vpop.xlane.xlu0 %683 }
 0x273   : > { %2463 = vpow2.f32 %v687_v41  ;;  %v686_v43 = vsub.f32 %v677_v30, %v684_v42 }
 0x275   : > { %v689_v44 = vmul.f32 1.442695, %v686_v43 }
 0x276   : > { %v2435_v45 = vpop.permute.xlu0 %2434 }
 0x277   : > { %2465 = vpow2.f32 %v689_v44  ;;  %v2437_v46 = vunpack.i.h.bf16 %v2435_v45  ;;  %v2436_v47 = vunpack.i.l.bf16 %v2435_v45 }
 0x279   : > { %v2378_v48 = vpack.c.bf16 %v2437_v46, %v2436_v47 }
 0x27a   : > { %v876_v11 = vpop.permute.xlu0 %875 }
 0x27b   : > { %2380 = vmatprep.subr.msk.bf16.mxu0 %vm2722_vm1, %v2378_v48 }
 0x27d   : > { %v2464_v49 = vpop.eup %2463 }
 0x27e   : > { %v691_v50 = vsel %vm678_vm2, %v2464_v49, 0.0 }
 0x27f   : > { %692 = vadd.xlane.f32.xlu1 %v691_v50 }
 0x281   : > { %v2466_v51 = vpop.eup %2465 }
 0x282   : > { %v694_v52 = vsel %vm678_vm2, %v2466_v51, 0.0 }
 0x283   : > { %695 = vadd.xlane.f32.xlu1 %v694_v52 }
 0x294   : > { %1166 = vrot.lane.b32.xlu1 %v2726_v23, %s2503_s16 }
 0x298   : > { %1168 = vrot.lane.b32.xlu1 %v2736_v26, %s2503_s16 }
 0x29c   : > { %2439 = vrot.lane.b32.xlu1 %v2728_v25, %s2504_s17 }
 0x2a0   : > { %877 = vrot.lane.b32.xlu1 %v2736_v26, %s2504_s17 }
 0x30c   : > { %v693_v59 = vpop.xlane.xlu1 %692 }
 0x30d   : > { %2467 = vrcp.f32 %v693_v59 }
 0x310   : > { %v696_v60 = vpop.xlane.xlu1 %695 }
 0x311   : > { %2469 = vrcp.f32 %v696_v60 }
 0x314   : > { %v1167_v61 = vpop.permute.xlu1 %1166 }
 0x317   : > { %v2468_v62 = vpop.eup %2467 }
 0x318   : > { %v1169_v63 = vpop.permute.xlu1 %1168  ;;  %v698_v0 = vmul.f32 %v2468_v62, %v2464_v49 }
 0x31a   : > { %vm701_vm3 = vcmp.ne.f32.partialorder %v698_v0, %v698_v0 }
 0x31b   : > { %v2470_v1 = vpop.eup %2469  ;;  %v703_v2 = vsel %vm701_vm3, 0.0, %v698_v0 }
 0x31c   : > { %2157 = vmatprep.mubr.msk.f32.mxu0 %vm678_vm2, %v703_v2  ;;  %v2440_v3 = vpop.permute.xlu1 %2439  ;;  %v700_v4 = vmul.f32 %v2470_v1, %v2466_v51 }
 0x31d   : > { %v2442_v5 = vunpack.i.h.bf16 %v2440_v3  ;;  %v2441_v6 = vunpack.i.l.bf16 %v2440_v3 }
 0x31e   : > { %vm702_vm4 = vcmp.ne.f32.partialorder %v700_v4, %v700_v4 }
 0x31f   : > { %v2360_v7 = vpack.c.bf16 %v2442_v5, %v2441_v6  ;;  %v704_v8 = vsel %vm702_vm4, 0.0, %v700_v4 }
 0x320   : > { %2158 = vmatmul.mubr.msk.f32.vlgmr.msra.gmra.mrb[4].mxu0 %vm678_vm2, %v704_v8  ;;  %v878_v15 = vpop.permute.xlu1 %877 }
 0x321   : > { %2383 = vmatpush3.bf16.xpose.msk.msra.mxu0 %vm2722_vm1, %v2378_v48  ;;  %2362 = vmatprep.subr.msk.bf16.mxu1 %vm2722_vm1, %v2360_v7 }
 0x322   : > { %2200 = vmatprep.mubr.msk.f32.mxu0 %vm588_vm0, %v1167_v61 }
 0x328   : > { %2201 = vmatmul.mubr.msk.f32.vlgmr.msra.gmra.mrb[6].mxu0 %vm588_vm0, %v1169_v63 }
 0x3f3   : > { %v2159_v9 = vpop.f32.mrb[4].mxu0 }
 0x3f4   : > { %v777_v10 = vpop.f32.mrb[5].mxu0 }
 0x3f5   : > { %2168 = vmatprep.mubr.msk.f32.mxu1 %vm588_vm0, %v777_v10 }
 0x3f6   : > { %2169 = vmatmul.mubr.msk.f32.vlgmr.msra.gmra.mrb[4].mxu1 %vm588_vm0, %v2159_v9 }
 0x3f7   : > { %2365 = vmatpush3.bf16.xpose.msk.msra.mxu1 %vm2722_vm1, %v2360_v7  ;;  %2175 = vmatprep.mubr.msk.f32.mxu1 %vm588_vm0, %v876_v11 }
 0x3fb   : > { %v2202_v12 = vpop.f32.mrb[6].mxu0 }
 0x3fc   : > { %v1258_v13 = vmul.f32 0.17677669, %v2202_v12  ;;  %v1248_v14 = vpop.f32.mrb[7].mxu0 }
 0x3fd   : > { %v1257_v16 = vmul.f32 0.17677669, %v1248_v14 }
 0x3fe   : > { %2176 = vmatmul.mubr.msk.f32.vlgmr.msra.gmra.mrb[6].mxu1 %vm588_vm0, %v878_v15  ;;  %v1262_v17 = vsel %vm678_vm2, %v1258_v13, -inf }
 0x3ff   : > { %1263 = vmax.xlane.f32.xlu1 %v1262_v17  ;;  %v1259_v18 = vsel %vm678_vm2, %v1257_v16, -inf }
 0x400   : > { %1260 = vmax.xlane.f32.xlu0 %v1259_v18 }
 0x410   : > { %2449 = vrot.lane.b32.xlu1 %v2728_v25, %s2505_s29 }
 0x414   : > { %1455 = vrot.lane.b32.xlu1 %v2726_v23, %s2505_s29  ;;  %v2805_v23 = vpack.i.bf16 %v2745_v36, %v2747_v37 }
 0x418   : > { %1457 = vrot.lane.b32.xlu1 %v2736_v26, %s2505_s29 }
 0x48c   : > { %v1264_v19 = vpop.xlane.xlu1 %1263 }
 0x48d   : > { %v1266_v20 = vsub.f32 %v1258_v13, %v1264_v19  ;;  %v1261_v21 = vpop.xlane.xlu0 %1260 }
 0x48e   : > { %v1265_v24 = vsub.f32 %v1257_v16, %v1261_v21  ;;  %v1880_v21 = vld [vmem:[%s2888_s3 + $0x1a8] sm:$0xff] }
 0x48f   : > { %v1269_v27 = vmul.f32 1.442695, %v1266_v20  ;;  %v1879_v20 = vld [vmem:[%s2888_s3 + $0x1a0] sm:$0xff] }
 0x490   : > { %v1267_v28 = vmul.f32 1.442695, %v1265_v24  ;;  %v2450_v41 = vpop.permute.xlu1 %2449  ;;  %v1881_v24 = vld [vmem:[%s2888_s3 + $0x1b0] sm:$0xff] }
 0x491   : > { %2471 = vpow2.f32 %v1269_v27  ;;  %v2452_v37 = vunpack.i.h.bf16 %v2450_v41  ;;  %v2451_v42 = vunpack.i.l.bf16 %v2450_v41  ;;  %v2370_v27 = vpack.c.bf16 %v1880_v21, %v1879_v20 }
 0x492   : > { %2473 = vpow2.f32 %v1267_v28  ;;  %v1882_v28 = vld [vmem:[%s2888_s3 + $0x1b8] sm:$0xff] }
 0x493   : > { %v2396_v47 = vpack.c.bf16 %v2452_v37, %v2451_v42  ;;  %v1885_v37 = vld [vmem:[%s2888_s3 + $0x1d0] sm:$0xff]  ;;  %v1886_v42 = vld [vmem:[%s2888_s3 + $0x1d8] sm:$0xff] }
 0x494   : > { %v1456_v53 = vpop.permute.xlu1 %1455 }
 0x498   : > { %v1458_v54 = vpop.permute.xlu1 %1457 }
 0x49b   : > { %v2472_v29 = vpop.eup %2471 }
 0x49c   : > { %v1274_v30 = vsel %vm678_vm2, %v2472_v29, 0.0  ;;  %v2474_v31 = vpop.eup %2473 }
 0x49d   : > { %1275 = vadd.xlane.f32.xlu0 %v1274_v30  ;;  %v1271_v25 = vsel %vm678_vm2, %v2474_v31, 0.0  ;;  %v1883_v30 = vld [vmem:[%s2888_s3 + $0x1c0] sm:$0xff] }
 0x4a1   : > { %1272 = vadd.xlane.f32.xlu0 %v1271_v25 }
 0x4b7   : > { %2444 = vrot.lane.b32.xlu0 %v2805_v23, %s2503_s16 }
 0x4d1   : > { %v2177_v26 = vpop.f32.mrb[6].mxu1 }
 0x4d2   : > { %v967_v32 = vmul.f32 0.17677669, %v2177_v26  ;;  %v957_v33 = vpop.f32.mrb[7].mxu1 }
 0x4d3   : > { %v966_v34 = vmul.f32 0.17677669, %v957_v33 }
 0x4d4   : > { %v971_v35 = vsel %vm678_vm2, %v967_v32, -inf }
 0x4d5   : > { %972 = vmax.xlane.f32.xlu1 %v971_v35  ;;  %v968_v38 = vsel %vm678_vm2, %v966_v34, -inf }
 0x4d6   : > { %969 = vmax.xlane.f32.xlu0 %v968_v38 }
 0x52a   : > { %v1276_v39 = vpop.xlane.xlu0 %1275 }
 0x52b   : > { %2475 = vrcp.f32 %v1276_v39 }
 0x52e   : > { %v1273_v40 = vpop.xlane.xlu0 %1272 }
 0x52f   : > { %2477 = vrcp.f32 %v1273_v40 }
 0x532   : > { %v2445_v36 = vpop.permute.xlu0 %2444 }
 0x533   : > { %v2447_v43 = vunpack.i.h.bf16 %v2445_v36  ;;  %v2446_v44 = vunpack.i.l.bf16 %v2445_v36 }
 0x535   : > { %v2476_v45 = vpop.eup %2475  ;;  %v2384_v46 = vpack.c.bf16 %v2447_v43, %v2446_v44 }
 0x536   : > { %v1280_v48 = vmul.f32 %v2476_v45, %v2472_v29  ;;  %v2374_v29 = vpack.c.bf16 %v1882_v28, %v1881_v24  ;;  %v2392_v45 = vpack.c.bf16 %v1886_v42, %v1885_v37 }
 0x537   : > { %2385 = vmatprep.subr.bf16.mxu0 %v2384_v46 }
 0x538   : > { %2387 = vmatpush3.bf16.msra.mxu0 %v2384_v46  ;;  %vm1282_vm5 = vcmp.ne.f32.partialorder %v1280_v48, %v1280_v48 }
 0x539   : > { %v2478_v49 = vpop.eup %2477  ;;  %2398 = vmatprep.subr.msk.bf16.mxu0 %vm2722_vm1, %v2396_v47  ;;  %v1284_v52 = vsel %vm1282_vm5, 0.0, %v1280_v48  ;;  %v1887_v48 = vld [vmem:[%s2888_s3 + $0x1e0] sm:$0xff] }
 0x53a   : > { %v1278_v50 = vmul.f32 %v2478_v49, %v2474_v31  ;;  %v1884_v31 = vld [vmem:[%s2888_s3 + $0x1c8] sm:$0xff] }
 0x53b   : > { %v2388_v25 = vpack.c.bf16 %v1884_v31, %v1883_v30  ;;  %v1888_v49 = vld [vmem:[%s2888_s3 + $0x1e8] sm:$0xff] }
 0x53c   : > { %vm1281_vm6 = vcmp.ne.f32.partialorder %v1278_v50, %v1278_v50 }
 0x53d   : > { %v1283_v51 = vsel %vm1281_vm6, 0.0, %v1278_v50 }
 0x53e   : > { %2207 = vmatprep.mubr.msk.f32.mxu0 %vm678_vm2, %v1283_v51 }
 0x53f   : > { %2208 = vmatmul.mubr.msk.f32.vlgmr.msra.gmra.mrb[8].mxu0 %vm678_vm2, %v1284_v52 }
 0x540   : > { %2225 = vmatprep.mubr.msk.f32.mxu0 %vm588_vm0, %v1456_v53 }
 0x541   : > { %2401 = vmatpush3.bf16.xpose.msk.msra.mxu0 %vm2722_vm1, %v2396_v47 }
 0x548   : > { %2226 = vmatmul.mubr.msk.f32.vlgmr.msra.gmra.mrb[10].mxu0 %vm588_vm0, %v1458_v54  ;;  %v2406_v54 = vpack.c.bf16 %v1888_v49, %v1887_v48 }
 0x562   : > { %v973_v55 = vpop.xlane.xlu1 %972 }
 0x563   : > { %v975_v56 = vsub.f32 %v967_v32, %v973_v55  ;;  %v970_v57 = vpop.xlane.xlu0 %969 }
 0x564   : > { %v974_v58 = vsub.f32 %v966_v34, %v970_v57 }
 0x565   : > { %v978_v59 = vmul.f32 1.442695, %v975_v56 }
 0x566   : > { %v976_v60 = vmul.f32 1.442695, %v974_v58  ;;  %v1889_v58 = vld [vmem:[%s2888_s3 + $0x1f0] sm:$0xff] }
 0x567   : > { %2479 = vpow2.f32 %v978_v59  ;;  %v1890_v59 = vld [vmem:[%s2888_s3 + $0x1f8] sm:$0xff] }
 0x568   : > { %2481 = vpow2.f32 %v976_v60 }
 0x571   : > { %v2480_v61 = vpop.eup %2479 }
 0x572   : > { %v983_v62 = vsel %vm678_vm2, %v2480_v61, 0.0  ;;  %v2482_v63 = vpop.eup %2481 }
 0x573   : > { %984 = vadd.xlane.f32.xlu0 %v983_v62  ;;  %v980_v0 = vsel %vm678_vm2, %v2482_v63, 0.0 }
 0x577   : > { %981 = vadd.xlane.f32.xlu0 %v980_v0 }
 0x58d   : > { %2454 = vrot.lane.b32.xlu0 %v2805_v23, %s2504_s17 }
 0x600   : > { %v985_v22 = vpop.xlane.xlu0 %984 }
 0x601   : > { %2483 = vrcp.f32 %v985_v22  ;;  %v1900_v22 = vld [vmem:[%s2889_s4 + $0x3] ss:$0 sm:$0xff] }
 0x604   : > { %v982_v1 = vpop.xlane.xlu0 %981 }
 0x605   : > { %2485 = vrcp.f32 %v982_v1 }
 0x608   : > { %v2455_v2 = vpop.permute.xlu0 %2454 }
 0x609   : > { %v2457_v3 = vunpack.i.h.bf16 %v2455_v2  ;;  %v2456_v4 = vunpack.i.l.bf16 %v2455_v2 }
 0x60b   : > { %v2484_v5 = vpop.eup %2483  ;;  %v2366_v6 = vpack.c.bf16 %v2457_v3, %v2456_v4 }
 0x60c   : > { %v989_v7 = vmul.f32 %v2484_v5, %v2480_v61  ;;  %v2410_v61 = vpack.c.bf16 %v1890_v59, %v1889_v58 }
 0x60d   : > { %2367 = vmatprep.subr.bf16.mxu1 %v2366_v6 }
 0x60e   : > { %2369 = vmatpush3.bf16.msra.mxu1 %v2366_v6  ;;  %vm991_vm7 = vcmp.ne.f32.partialorder %v989_v7, %v989_v7 }
 0x60f   : > { %v2486_v8 = vpop.eup %2485  ;;  %v993_v13 = vsel %vm991_vm7, 0.0, %v989_v7  ;;  %2371 = vmatprep.subr.bf16.mxu1 %v2370_v27 }
 0x610   : > { %v987_v9 = vmul.f32 %v2486_v8, %v2482_v63 }
 0x612   : > { %v2209_v10 = vpop.f32.mrb[8].mxu0  ;;  %vm990_vm8 = vcmp.ne.f32.partialorder %v987_v9, %v987_v9 }
 0x613   : > { %v1363_v11 = vpop.f32.mrb[9].mxu0  ;;  %v992_v12 = vsel %vm990_vm8, 0.0, %v987_v9 }
 0x614   : > { %2182 = vmatprep.mubr.msk.f32.mxu1 %vm678_vm2, %v992_v12 }
 0x615   : > { %2183 = vmatmul.mubr.msk.f32.vlgmr.msra.gmra.mrb[8].mxu1 %vm678_vm2, %v993_v13 }
 0x616   : > { %2373 = vmatpush3.bf16.msra.mxu1 %v2370_v27 }
 0x617   : > { %2375 = vmatprep.subr.bf16.mxu1 %v2374_v29 }
 0x61a   : > { %2377 = vmatpush3.bf16.msra.mxu1 %v2374_v29 }
 0x61b   : > { %v2227_v14 = vpop.f32.mrb[10].mxu0  ;;  %2389 = vmatprep.subr.bf16.mxu1 %v2388_v25 }
 0x61c   : > { %v1537_v15 = vpop.f32.mrb[11].mxu0  ;;  %v1547_v17 = vmul.f32 0.17677669, %v2227_v14 }
 0x61d   : > { %v1546_v16 = vmul.f32 0.17677669, %v1537_v15 }
 0x61e   : > { %v1551_v19 = vsel %vm678_vm2, %v1547_v17, -inf }
 0x61f   : > { %v1548_v18 = vsel %vm678_vm2, %v1546_v16, -inf }
 0x620   : > { %1549 = vmax.xlane.f32.xlu1 %v1548_v18 }
 0x624   : > { %1552 = vmax.xlane.f32.xlu1 %v1551_v19 }
 0x6ad   : > { %v1550_v26 = vpop.xlane.xlu1 %1549 }
 0x6ae   : > { %v1554_v32 = vsub.f32 %v1546_v16, %v1550_v26 }
 0x6b0   : > { %v1556_v35 = vmul.f32 1.442695, %v1554_v32 }
 0x6b1   : > { %v1553_v33 = vpop.xlane.xlu1 %1552 }
 0x6b2   : > { %v1555_v34 = vsub.f32 %v1547_v17, %v1553_v33 }
 0x6b4   : > { %v1558_v38 = vmul.f32 1.442695, %v1555_v34 }
 0x6b6   : > { %2487 = vpow2.f32 %v1558_v38 }
 0x6b7   : > { %2489 = vpow2.f32 %v1556_v35 }
 0x6c0   : > { %v2488_v39 = vpop.eup %2487 }
 0x6c1   : > { %v1563_v40 = vsel %vm678_vm2, %v2488_v39, 0.0  ;;  %v2490_v41 = vpop.eup %2489 }
 0x6c2   : > { %1564 = vadd.xlane.f32.xlu1 %v1563_v40  ;;  %v1560_v36 = vsel %vm678_vm2, %v2490_v41, 0.0 }
 0x6c6   : > { %1561 = vadd.xlane.f32.xlu1 %v1560_v36 }
 0x6d7   : > { %2459 = vrot.lane.b32.xlu1 %v2805_v23, %s2505_s29 }
 0x6e8   : > { %v2184_v43 = vpop.f32.mrb[8].mxu1 }
 0x6e9   : > { %v1074_v44 = vpop.f32.mrb[9].mxu1 }
 0x6ea   : > { %2193 = vmatprep.mubr.msk.f32.mxu1 %vm588_vm0, %v1074_v44 }
 0x6eb   : > { %2194 = vmatmul.mubr.msk.f32.vlgmr.msra.gmra.mrb[4].mxu1 %vm588_vm0, %v2184_v43 }
 0x6ec   : > { %2391 = vmatpush3.bf16.msra.mxu1 %v2388_v25  ;;  %2218 = vmatprep.mubr.msk.f32.mxu1 %vm588_vm0, %v1363_v11 }
 0x6ed   : > { %2393 = vmatprep.subr.bf16.mxu1 %v2392_v45 }
 0x6f0   : > { %2395 = vmatpush3.bf16.msra.mxu1 %v2392_v45 }
 0x6f3   : > { %2219 = vmatmul.mubr.msk.f32.vlgmr.msra.gmra.mrb[4].mxu1 %vm588_vm0, %v2209_v10 }
 0x74f   : > { %v1565_v23 = vpop.xlane.xlu1 %1564 }
 0x750   : > { %2491 = vrcp.f32 %v1565_v23 }
 0x753   : > { %v1562_v46 = vpop.xlane.xlu1 %1561 }
 0x754   : > { %2493 = vrcp.f32 %v1562_v46 }
 0x757   : > { %v2460_v47 = vpop.permute.xlu1 %2459 }
 0x758   : > { %v2462_v50 = vunpack.i.h.bf16 %v2460_v47  ;;  %v2461_v51 = vunpack.i.l.bf16 %v2460_v47 }
 0x75a   : > { %v2492_v52 = vpop.eup %2491  ;;  %v2402_v53 = vpack.c.bf16 %v2462_v50, %v2461_v51 }
 0x75b   : > { %v1569_v55 = vmul.f32 %v2492_v52, %v2488_v39 }
 0x75c   : > { %2403 = vmatprep.subr.bf16.mxu1 %v2402_v53 }
 0x75d   : > { %2405 = vmatpush3.bf16.msra.mxu1 %v2402_v53  ;;  %vm1571_vm9 = vcmp.ne.f32.partialorder %v1569_v55, %v1569_v55 }
 0x75e   : > { %v2494_v56 = vpop.eup %2493  ;;  %2407 = vmatprep.subr.bf16.mxu1 %v2406_v54  ;;  %v1573_v62 = vsel %vm1571_vm9, 0.0, %v1569_v55 }
 0x75f   : > { %v1567_v57 = vmul.f32 %v2494_v56, %v2490_v41 }
 0x761   : > { %vm1570_vm10 = vcmp.ne.f32.partialorder %v1567_v57, %v1567_v57 }
 0x762   : > { %v1572_v60 = vsel %vm1570_vm10, 0.0, %v1567_v57 }
 0x763   : > { %2232 = vmatprep.mubr.msk.f32.mxu1 %vm678_vm2, %v1572_v60 }
 0x764   : > { %2233 = vmatmul.mubr.msk.f32.vlgmr.msra.gmra.mrb[10].mxu1 %vm678_vm2, %v1573_v62 }
 0x765   : > { %2409 = vmatpush3.bf16.msra.mxu1 %v2406_v54 }
 0x766   : > { %2411 = vmatprep.subr.bf16.mxu1 %v2410_v61 }
 0x769   : > { %2413 = vmatpush3.bf16.msra.mxu1 %v2410_v61 }
 0x837   : > { %v2234_v63 = vpop.f32.mrb[10].mxu1 }
 0x838   : > { %v1652_v0 = vpop.f32.mrb[11].mxu1 }
 0x839   : > { %2243 = vmatprep.mubr.msk.f32.mxu1 %vm588_vm0, %v1652_v0 }
 0x83a   : > { %2244 = vmatmul.mubr.msk.f32.vlgmr.msra.gmra.mrb[4].mxu1 %vm588_vm0, %v2234_v63 }
 0x90d   : > { %v2245_v1 = vpop.f32.mrb[4].mxu1 }
 0x90e   : > { %v2414_v2 = vadd.f32 %v2245_v1, %v1900_v22  ;;  %v1733_v3 = vpop.f32.mrb[5].mxu1 }
 0x90f   : > { %v2415_v4 = vadd.f32 %v1900_v22, %v1733_v3 }
 0x910   : > { %1745 = vst [vmem:[%s264_s8 + $0x8] sm:$0xff] %v2414_v2 }
 0x911   : > { %1744 = vst [vmem:[%s264_s8] sm:$0xff] %v2415_v4 }
 0x912 PF: > { %s15_s18 = sadd.s32 1, %s2501_s18  }
 0x913   : > { %p12_p4 = scmp.ge.s32.totalorder %s15_s18, 4  }
 0x915   :  { %14 = sbr.rel (!%p12_p4) target bundleno = 1 (0x1), region = 82 }

</bundles_post_ra>
